<compile_context>
chip_gen: v6e
topology: v6e:2x2x1
jax: 0.10.0
libtpu: 0.0.40
codegen_flags: <defaults>
</compile_context>

<pallas_src>
import numpy as np

import jax
import jax.numpy as jnp
from jax.experimental import pallas as pl
from jax.experimental.pallas import tpu as pltpu


def gaussian_taps_1d(kernel_size: int = 5) -> np.ndarray:
    """1-D factor of the PyTorch GaussianFilter weight (g2d == outer(g1, g1))."""
    mean = (kernel_size - 1) / 2.0
    variance = (kernel_size / 6.0) ** 2.0
    coords = np.arange(kernel_size, dtype=np.float64)
    g1 = np.exp(-((coords - mean) ** 2) / (2.0 * variance))
    return g1 / g1.sum()


def _build_tap_weights(H: int, W: int, kernel_size: int) -> np.ndarray:
    """(2*(K-1), H*W) f32: per-tap weights with zero-padding masks folded in.

    Rows [0, K-1)        : horizontal taps t in [-R..R], t != 0 (column masks)
    Rows [K-1, 2*(K-1))  : vertical   taps t in [-R..R], t != 0 (row masks)
    """
    HW = H * W
    K = kernel_size
    R = (K - 1) // 2
    taps = gaussian_taps_1d(K)
    lane = np.arange(HW)
    col = lane % W
    row = lane // W

    planes = []
    offsets = [t for t in range(-R, R + 1) if t != 0]
    for t in offsets:  # horizontal (column-boundary) masks
        valid = (col >= -t) if t < 0 else (col < (W - t))
        planes.append(valid.astype(np.float32) * np.float32(taps[t + R]))
    for t in offsets:  # vertical (row-boundary) masks
        valid = (row >= -t) if t < 0 else (row < (H - t))
        planes.append(valid.astype(np.float32) * np.float32(taps[t + R]))
    return np.stack(planes, axis=0).astype(np.float32)


def _make_filter_kernel(H: int, W: int, kernel_size: int, recursions: int):
    HW = H * W
    K = kernel_size
    R = (K - 1) // 2
    center = float(gaussian_taps_1d(K)[R])
    offsets = [t for t in range(-R, R + 1) if t != 0]
    nt = len(offsets)

    def kernel(w_ref, x_ref, o_ref):
        w = w_ref[...]                                  # (2*(K-1), HW) f32
        x = x_ref[...].astype(jnp.float32)              # (block_nc, HW)
        c = jnp.float32(center)

        for _ in range(recursions):
            # Horizontal pass: neighbor (h, w+t) lives t lanes away.
            h_acc = c * x
            for idx, t in enumerate(offsets):
                shifted = pltpu.roll(x, (-t) % HW, 1)            # val[p] = x[p + t]
                h_acc = h_acc + shifted * w[idx:idx + 1, :]
            # Vertical pass: neighbor (h+t, w) lives t*W lanes away.
            v_acc = c * h_acc
            for idx, t in enumerate(offsets):
                shifted = pltpu.roll(h_acc, (-t * W) % HW, 1)    # val[p] = h[p + t*W]
                v_acc = v_acc + shifted * w[nt + idx:nt + idx + 1, :]
            x = v_acc

        o_ref[...] = x.astype(o_ref.dtype)

    return kernel


def _choose_block_nc(NC: int, HW: int, itemsize: int) -> int:
    """Pick an NC-block size: full batch if tiny, else a multiple-of-8 divisor."""
    if NC % 8 != 0 or NC * HW * itemsize <= (1 << 20):
        return NC
    target_rows = max(8, ((2 << 20) // (HW * itemsize)) // 8 * 8)
    rows = min(NC, target_rows)
    rows -= rows % 8
    while rows > 8 and NC % rows != 0:
        rows -= 8
    if rows < 8 or NC % rows != 0:
        return NC
    return rows


def filter_low(img: jax.Array, recursions: int = 1, kernel_size: int = 5) -> jax.Array:
    """FilterLow.forward: `recursions` applications of the depthwise Gaussian blur."""
    N, C, H, W = img.shape
    NC, HW = N * C, H * W
    itemsize = jnp.dtype(img.dtype).itemsize

    x2d = img.reshape(NC, HW)  # free row-major view: no transpose, no pad copy
    weights = jnp.asarray(_build_tap_weights(H, W, kernel_size))  # (2*(K-1), HW)

    block_nc = _choose_block_nc(NC, HW, itemsize)
    grid = (NC // block_nc,)

    # VMEM budget: double-buffered in/out blocks + f32 intermediates + weights.
    block_io = block_nc * HW * itemsize
    block_f32 = block_nc * HW * 4
    weights_b = weights.size * 4
    needed = 4 * block_io + 4 * block_f32 + 2 * weights_b + (1 << 20)
    vmem_limit = int(min(64 << 20, max(16 << 20, needed)))

    kernel = _make_filter_kernel(H, W, kernel_size, recursions)
    out2d = pl.pallas_call(
        kernel,
        out_shape=jax.ShapeDtypeStruct((NC, HW), img.dtype),
        grid=grid,
        in_specs=[
            pl.BlockSpec(weights.shape, lambda i: (0, 0)),      # tap/mask planes
            pl.BlockSpec((block_nc, HW), lambda i: (i, 0)),     # image rows
        ],
        out_specs=pl.BlockSpec((block_nc, HW), lambda i: (i, 0)),
        compiler_params=pltpu.CompilerParams(
            dimension_semantics=("parallel",),   # NC rows are independent (v7x: 2 TCs)
            vmem_limit_bytes=vmem_limit,
        ),
        cost_estimate=pl.CostEstimate(
            flops=int(20 * recursions * NC * HW),
            transcendentals=0,
            bytes_accessed=int(2 * NC * HW * itemsize + len(grid) * weights_b),
        ),
    )(weights, x2d)
    return out2d.reshape(N, C, H, W)


def filter_low_reference(img: jax.Array, recursions: int = 1, kernel_size: int = 5) -> jax.Array:
    """Pure-JAX reference (grouped conv), matching nn.Conv2d semantics."""
    g1 = gaussian_taps_1d(kernel_size)
    g2 = jnp.asarray(np.outer(g1, g1), dtype=jnp.float32)
    C = img.shape[1]
    w = jnp.broadcast_to(g2, (C, 1, kernel_size, kernel_size))
    pad = (kernel_size - 1) // 2
    out = img
    for _ in range(recursions):
        out = jax.lax.conv_general_dilated(
            out, w,
            window_strides=(1, 1),
            padding=((pad, pad), (pad, pad)),
            dimension_numbers=("NCHW", "OIHW", "NCHW"),
            feature_group_count=C,
        )
    return out


if __name__ == "__main__":
    key = jax.random.PRNGKey(0)
    N, C, H, W = 2, 3, 16, 16  # Conv2d(3, 3, ..., groups=3) => 3 channels
    x = jax.random.normal(key, (N, C, H, W), dtype=jnp.float32)

    # recursions = 1 (module default)
    y = jax.block_until_ready(filter_low(x, recursions=1, kernel_size=5))
    y_ref = jax.block_until_ready(filter_low_reference(x, recursions=1, kernel_size=5))
    assert y.shape == (N, C, H, W)
    assert jnp.allclose(y, y_ref, atol=1e-5, rtol=1e-5), "mismatch vs reference (recursions=1)"

    # fused in-kernel recursion path
    y2 = jax.block_until_ready(filter_low(x, recursions=2, kernel_size=5))
    y2_ref = jax.block_until_ready(filter_low_reference(x, recursions=2, kernel_size=5))
    assert jnp.allclose(y2, y2_ref, atol=1e-5, rtol=1e-5), "mismatch vs reference (recursions=2)"

    print("KERNEL_OK")
</pallas_src>

<mosaic_0001>
module attributes {stable_mosaic.version = 11 : i64} {
  func.func @kernel(%arg0: i32, %arg1: memref<8x256xf32, #tpu.memory_space<vmem>>, %arg2: memref<6x256xf32, #tpu.memory_space<vmem>>, %arg3: memref<6x256xf32, #tpu.memory_space<vmem>>) attributes {dimension_semantics = [#tpu.dimension_semantics<parallel>], iteration_bounds = array<i64: 1>, scalar_prefetch = 0 : i64, scratch_operands = 0 : i64, tpu.core_type = #tpu.core_type<tc>, window_params = [{pipeline_mode = #tpu.pipeline_mode<synchronous>, transform_indices = @transform_0, window_bounds = array<i64: 8, 256>}, {transform_indices = @transform_1, window_bounds = array<i64: 6, 256>}, {transform_indices = @transform_2, window_bounds = array<i64: 6, 256>}]} {
    %c0 = arith.constant 0 : index
    %c0_0 = arith.constant 0 : index
    %0 = vector.load %arg1[%c0, %c0_0] : memref<8x256xf32, #tpu.memory_space<vmem>>, vector<8x256xf32>
    %c0_1 = arith.constant 0 : index
    %c0_2 = arith.constant 0 : index
    %1 = vector.load %arg2[%c0_1, %c0_2] : memref<6x256xf32, #tpu.memory_space<vmem>>, vector<6x256xf32>
    %cst = arith.constant 0.479438305 : f32
    %2 = vector.broadcast %cst : f32 to vector<6x256xf32>
    %3 = arith.mulf %2, %1 : vector<6x256xf32>
    %c2_i32 = arith.constant 2 : i32
    %4 = tpu.dynamic_rotate %1 by %c2_i32 dim 1 : vector<6x256xf32>, i32 -> vector<6x256xf32>
    %5 = vector.extract_strided_slice %0 {offsets = [0, 0], sizes = [1, 256], strides = [1, 1]} : vector<8x256xf32> to vector<1x256xf32>
    %6 = vector.broadcast %5 : vector<1x256xf32> to vector<6x256xf32>
    %7 = arith.mulf %4, %6 : vector<6x256xf32>
    %8 = arith.addf %3, %7 : vector<6x256xf32>
    %c1_i32 = arith.constant 1 : i32
    %9 = tpu.dynamic_rotate %1 by %c1_i32 dim 1 : vector<6x256xf32>, i32 -> vector<6x256xf32>
    %10 = vector.extract_strided_slice %0 {offsets = [1, 0], sizes = [1, 256], strides = [1, 1]} : vector<8x256xf32> to vector<1x256xf32>
    %11 = vector.broadcast %10 : vector<1x256xf32> to vector<6x256xf32>
    %12 = arith.mulf %9, %11 : vector<6x256xf32>
    %13 = arith.addf %8, %12 : vector<6x256xf32>
    %c255_i32 = arith.constant 255 : i32
    %14 = tpu.dynamic_rotate %1 by %c255_i32 dim 1 : vector<6x256xf32>, i32 -> vector<6x256xf32>
    %15 = vector.extract_strided_slice %0 {offsets = [2, 0], sizes = [1, 256], strides = [1, 1]} : vector<8x256xf32> to vector<1x256xf32>
    %16 = vector.broadcast %15 : vector<1x256xf32> to vector<6x256xf32>
    %17 = arith.mulf %14, %16 : vector<6x256xf32>
    %18 = arith.addf %13, %17 : vector<6x256xf32>
    %c254_i32 = arith.constant 254 : i32
    %19 = tpu.dynamic_rotate %1 by %c254_i32 dim 1 : vector<6x256xf32>, i32 -> vector<6x256xf32>
    %20 = vector.extract_strided_slice %0 {offsets = [3, 0], sizes = [1, 256], strides = [1, 1]} : vector<8x256xf32> to vector<1x256xf32>
    %21 = vector.broadcast %20 : vector<1x256xf32> to vector<6x256xf32>
    %22 = arith.mulf %19, %21 : vector<6x256xf32>
    %23 = arith.addf %18, %22 : vector<6x256xf32>
    %cst_3 = arith.constant 0.479438305 : f32
    %24 = vector.broadcast %cst_3 : f32 to vector<6x256xf32>
    %25 = arith.mulf %24, %23 : vector<6x256xf32>
    %c32_i32 = arith.constant 32 : i32
    %26 = tpu.dynamic_rotate %23 by %c32_i32 dim 1 : vector<6x256xf32>, i32 -> vector<6x256xf32>
    %27 = vector.extract_strided_slice %0 {offsets = [4, 0], sizes = [1, 256], strides = [1, 1]} : vector<8x256xf32> to vector<1x256xf32>
    %28 = vector.broadcast %27 : vector<1x256xf32> to vector<6x256xf32>
    %29 = arith.mulf %26, %28 : vector<6x256xf32>
    %30 = arith.addf %25, %29 : vector<6x256xf32>
    %c16_i32 = arith.constant 16 : i32
    %31 = tpu.dynamic_rotate %23 by %c16_i32 dim 1 : vector<6x256xf32>, i32 -> vector<6x256xf32>
    %32 = vector.extract_strided_slice %0 {offsets = [5, 0], sizes = [1, 256], strides = [1, 1]} : vector<8x256xf32> to vector<1x256xf32>
    %33 = vector.broadcast %32 : vector<1x256xf32> to vector<6x256xf32>
    %34 = arith.mulf %31, %33 : vector<6x256xf32>
    %35 = arith.addf %30, %34 : vector<6x256xf32>
    %c240_i32 = arith.constant 240 : i32
    %36 = tpu.dynamic_rotate %23 by %c240_i32 dim 1 : vector<6x256xf32>, i32 -> vector<6x256xf32>
    %37 = vector.extract_strided_slice %0 {offsets = [6, 0], sizes = [1, 256], strides = [1, 1]} : vector<8x256xf32> to vector<1x256xf32>
    %38 = vector.broadcast %37 : vector<1x256xf32> to vector<6x256xf32>
    %39 = arith.mulf %36, %38 : vector<6x256xf32>
    %40 = arith.addf %35, %39 : vector<6x256xf32>
    %c224_i32 = arith.constant 224 : i32
    %41 = tpu.dynamic_rotate %23 by %c224_i32 dim 1 : vector<6x256xf32>, i32 -> vector<6x256xf32>
    %42 = vector.extract_strided_slice %0 {offsets = [7, 0], sizes = [1, 256], strides = [1, 1]} : vector<8x256xf32> to vector<1x256xf32>
    %43 = vector.broadcast %42 : vector<1x256xf32> to vector<6x256xf32>
    %44 = arith.mulf %41, %43 : vector<6x256xf32>
    %45 = arith.addf %40, %44 : vector<6x256xf32>
    %c0_4 = arith.constant 0 : index
    %c0_5 = arith.constant 0 : index
    %46 = vector.load %arg3[%c0_4, %c0_5] : memref<6x256xf32, #tpu.memory_space<vmem>>, vector<6x256xf32>
    tpu.vector_store %arg3[%c0_4, %c0_5], %45 {strides = array<i32>} : memref<6x256xf32, #tpu.memory_space<vmem>>, vector<6x256xf32>,
    return
  }
  func.func @transform_0(%arg0: i32) -> (i32, i32) {
    %c0_i32 = arith.constant 0 : i32
    %c0_i32_0 = arith.constant 0 : i32
    %c0_i32_1 = arith.constant 0 : i32
    return %c0_i32, %c0_i32_0 : i32, i32
  }
  func.func @transform_1(%arg0: i32) -> (i32, i32) {
    %c0_i32 = arith.constant 0 : i32
    %c0_i32_0 = arith.constant 0 : i32
    return %arg0, %c0_i32 : i32, i32
  }
  func.func @transform_2(%arg0: i32) -> (i32, i32) {
    %c0_i32 = arith.constant 0 : i32
    %c0_i32_0 = arith.constant 0 : i32
    return %arg0, %c0_i32 : i32, i32
  }
}

</mosaic_0001>

<bundles_post_ra>
// kernel: tpu_custom_call.1
= control target key start
LH: loop header
LB: loop body
LE: loop exit
PB: predicated region body
PF: predicated region fallthrough
CT: control target
= control target key end

     0   :  { %7 = vsyncpa [#allocation3], 0  ;;  %s380_s0 = inlined_call_operand.hbm [shape: f32[8,256], index: 0, kind: input, shape index: {}]   ;;  %s381_s1 = inlined_call_operand.hbm [shape: f32[6,256], index: 1, kind: input, shape index: {}]   ;;  %s382_s2 = inlined_call_operand.hbm [shape: f32[6,256], index: 2, kind: output, shape index: {}]  }
   0x1   :  { %8 = vsyncpa [#allocation6], 0 }
   0x2   :  { %9 = vsyncpa [#allocation4], 0  ;;  %s293_s9 = smov [#allocation2]   ;;  %s294_s11 = smov [#allocation5]  }
   0x3   :  { %s16_s10 = sshll.u32 %s293_s9, 4  ;;  %s26_s12 = sshll.u32 %s294_s11, 4  ;;  %s17_s10 = int_to_ptr.vmem [resolvable:$true] %s16_s10  ;;  %s27_s12 = int_to_ptr.vmem [resolvable:$true] %s26_s12 }
   0x4   :  { %s235_s13 = scalar_lea.vmem %s17_s10, 256  ;;  %p240_p1 = scmp.lt.s32.totalorder %s17_s10, %s17_s10 }
   0x5   :  { %p236_p0 = scmp.ne.s32.totalorder %s17_s10, %s235_s13  ;;  %p241_p2 = scmp.lt.s32.totalorder %s235_s13, %s235_s13 }
   0x7   :  { %p242_p3 = por %p241_p2, %p240_p1 }
   0x9   :  { %p243_p4 = pnand %p242_p3, %p236_p0 }
   0xb   :  { %246 = shalt.err (!%p243_p4)
}
   0xc   :  { %19 = dma.hbm_to_vmem [thread:$0]  %s380_s0, 256, %s17_s10, [#allocation3]  }
   0xd   :  { %s255_s16 = scalar_lea.vmem %s27_s12, 256  ;;  %p260_p6 = scmp.lt.s32.totalorder %s27_s12, %s27_s12 }
   0xe   :  { %p256_p5 = scmp.ne.s32.totalorder %s27_s12, %s255_s16  ;;  %p261_p7 = scmp.lt.s32.totalorder %s255_s16, %s255_s16 }
  0x10   :  { %p262_p8 = por %p261_p7, %p260_p6 }
  0x12   :  { %p263_p9 = pnand %p262_p8, %p256_p5 }
  0x14   :  { %266 = shalt.err (!%p263_p9)
}
  0x15   :  { %29 = dma.hbm_to_vmem [thread:$0]  %s381_s1, 256, %s27_s12, [#allocation6]  }
  0x16   :  { %287 = dma.done.wait [#allocation3], 256  }
  0x17   :  { %288 = vsyncadd [#allocation3], 4294967040 }
  0x18   :  { %289 = dma.done.wait [#allocation6], 256  }
  0x19   :  { %290 = vsyncadd [#allocation6], 4294967040  ;;  %v38_v0 = vld [vmem:[#allocation5] sm:$0x3f]  ;;  %s295_s19 = smov 1   ;;  %s296_s20 = smov 2   ;;  %v46_v2 = vlaneseq }
  0x1a   :  { %63 = vrot.lane.b32.xlu1 %v38_v0, %s295_s19  ;;  %42 = vrot.lane.b32.xlu0 %v38_v0, %s296_s20  ;;  %v39_v1 = vld [vmem:[#allocation5 + $0x8] sm:$0x3f]  ;;  %s297_s0 = smov 127   ;;  %s298_s21 = smov 126   ;;  %v330_v6 = vld [vmem:[#allocation2] sm:$0xff]  ;;  %v332_v7 = vld [vmem:[#allocation2 + $0x8] sm:$0xff] }
  0x1b   :  { %v325_v3 = vshrl.u32 %v46_v2, 7  ;;  %v327_v4 = vand.u32 127, %v46_v2  ;;  %v41_v18 = vmul.f32 0.4794383, %v39_v1  ;;  %v40_v20 = vmul.f32 0.4794383, %v38_v0 }
  0x1c   :  { %s299_s1 = smov 32   ;;  %s300_s22 = smov 16  }
  0x1d   :  { %v53_v5 = vsub.s32 0, %v325_v3  ;;  %v72_v10 = vsub.s32 1, %v325_v3  ;;  %vm67_vm0 = vcmp.lt.s32.totalorder %v327_v4, 1  ;;  %vm48_vm1 = vcmp.lt.s32.totalorder %v327_v4, 2  ;;  %s301_s23 = smov 112   ;;  %s302_s24 = smov 96  }
  0x1e   :  { %65 = vrot.lane.b32.xlu1 %v39_v1, %s295_s19  ;;  %44 = vrot.lane.b32.xlu0 %v39_v1, %s296_s20  ;;  %v91_v13 = vsub.s32 2, %v325_v3  ;;  %vm86_vm2 = vcmp.lt.s32.totalorder %v327_v4, 127  ;;  %v110_v14 = vsub.s32 3, %v325_v3  ;;  %vm105_vm3 = vcmp.lt.s32.totalorder %v327_v4, 126  ;;  %s303_s25 = smov [#allocation7]  }
  0x1f   :  { %v54_v11 = vrot.slane %v330_v6, %v53_v5  ;;  %v58_v12 = vrot.slane %v332_v7, %v53_v5  ;;  %v73_v16 = vrot.slane %v330_v6, %v72_v10  ;;  %v77_v17 = vrot.slane %v332_v7, %v72_v10  ;;  %s206_s26 = sshll.u32 %s303_s25, 4  ;;  %s207_s26 = int_to_ptr.vmem [resolvable:$true] %s206_s26 }
  0x20   :  { %v92_v27 = vrot.slane %v330_v6, %v91_v13  ;;  %v96_v28 = vrot.slane %v332_v7, %v91_v13  ;;  %v111_v37 = vrot.slane %v330_v6, %v110_v14  ;;  %v115_v38 = vrot.slane %v332_v7, %v110_v14  ;;  %s267_s27 = scalar_lea.vmem %s207_s26, 256  ;;  %p272_p11 = scmp.lt.s32.totalorder %s207_s26, %s207_s26 }
  0x21   :  { %v131_v53 = vsub.s32 4, %v325_v3  ;;  %vm126_vm4 = vcmp.lt.s32.totalorder %v327_v4, 32  ;;  %v150_v56 = vsub.s32 5, %v325_v3  ;;  %vm145_vm5 = vcmp.lt.s32.totalorder %v327_v4, 16  ;;  %p268_p10 = scmp.ne.s32.totalorder %s207_s26, %s267_s27  ;;  %p273_p12 = scmp.lt.s32.totalorder %s267_s27, %s267_s27 }
  0x22   :  { %84 = vrot.lane.b32.xlu1 %v39_v1, %s297_s0  ;;  %82 = vrot.lane.b32.xlu0 %v38_v0, %s297_s0  ;;  %v169_v59 = vsub.s32 6, %v325_v3  ;;  %vm164_vm6 = vcmp.lt.s32.totalorder %v327_v4, 112  ;;  %vm183_vm7 = vcmp.lt.s32.totalorder %v327_v4, 96 }
  0x23   :  { %v132_v57 = vrot.slane %v330_v6, %v131_v53  ;;  %v136_v58 = vrot.slane %v332_v7, %v131_v53  ;;  %v151_v63 = vrot.slane %v330_v6, %v150_v56  ;;  %p274_p13 = por %p273_p12, %p272_p11 }
  0x25   :  { %p275_p0 = pnand %p274_p13, %p268_p10 }
  0x26   :  { %103 = vrot.lane.b32.xlu1 %v39_v1, %s298_s21  ;;  %101 = vrot.lane.b32.xlu0 %v38_v0, %s298_s21  ;;  %v155_v0 = vrot.slane %v332_v7, %v150_v56 }
  0x8c   :  { %v64_v8 = vpop.permute.xlu1 %63  ;;  %v43_v9 = vpop.permute.xlu0 %42 }
  0x90   :  { %v66_v15 = vpop.permute.xlu1 %65  ;;  %v45_v19 = vpop.permute.xlu0 %44 }
  0x91   :  { %v68_v21 = vsel %vm67_vm0, %v64_v8, %v66_v15  ;;  %v69_v22 = vsel %vm67_vm0, %v66_v15, %v64_v8  ;;  %v49_v23 = vsel %vm48_vm1, %v43_v9, %v45_v19  ;;  %v50_v24 = vsel %vm48_vm1, %v45_v19, %v43_v9 }
  0x92   :  { %v59_v25 = vmul.f32 %v54_v11, %v50_v24  ;;  %v60_v26 = vmul.f32 %v58_v12, %v49_v23  ;;  %v78_v29 = vmul.f32 %v73_v16, %v69_v22  ;;  %v79_v30 = vmul.f32 %v77_v17, %v68_v21 }
  0x93   :  { %v188_v8 = vsub.s32 7, %v325_v3  ;;  %v170_v11 = vrot.slane %v330_v6, %v169_v59  ;;  %v174_v12 = vrot.slane %v332_v7, %v169_v59 }
  0x94   :  { %v61_v31 = vadd.f32 %v59_v25, %v40_v20  ;;  %v62_v32 = vadd.f32 %v60_v26, %v41_v18  ;;  %v85_v33 = vpop.permute.xlu1 %84  ;;  %v83_v34 = vpop.permute.xlu0 %82 }
  0x95   :  { %v87_v35 = vsel %vm86_vm2, %v83_v34, %v85_v33  ;;  %v88_v36 = vsel %vm86_vm2, %v85_v33, %v83_v34  ;;  %v189_v21 = vrot.slane %v330_v6, %v188_v8  ;;  %v193_v3 = vrot.slane %v332_v7, %v188_v8 }
  0x96   :  { %v80_v39 = vadd.f32 %v78_v29, %v61_v31  ;;  %v81_v40 = vadd.f32 %v79_v30, %v62_v32  ;;  %v97_v41 = vmul.f32 %v92_v27, %v87_v35  ;;  %v98_v42 = vmul.f32 %v96_v28, %v88_v36 }
  0x98   :  { %v104_v43 = vpop.permute.xlu1 %103  ;;  %v102_v44 = vpop.permute.xlu0 %101  ;;  %v99_v47 = vadd.f32 %v97_v41, %v80_v39  ;;  %v100_v48 = vadd.f32 %v98_v42, %v81_v40 }
  0x99   :  { %v106_v45 = vsel %vm105_vm3, %v102_v44, %v104_v43  ;;  %v107_v46 = vsel %vm105_vm3, %v104_v43, %v102_v44 }
  0x9a   :  { %v116_v49 = vmul.f32 %v111_v37, %v106_v45  ;;  %v117_v50 = vmul.f32 %v115_v38, %v107_v46 }
  0x9c   :  { %v118_v51 = vadd.f32 %v116_v49, %v99_v47  ;;  %v119_v52 = vadd.f32 %v117_v50, %v100_v48 }
  0x9e   :  { %124 = vrot.lane.b32.xlu1 %v119_v52, %s299_s1  ;;  %122 = vrot.lane.b32.xlu0 %v118_v51, %s299_s1  ;;  %v121_v13 = vmul.f32 0.4794383, %v119_v52  ;;  %v120_v14 = vmul.f32 0.4794383, %v118_v51 }
  0xa2   :  { %143 = vrot.lane.b32.xlu1 %v119_v52, %s300_s22  ;;  %141 = vrot.lane.b32.xlu0 %v118_v51, %s300_s22 }
  0xa6   :  { %162 = vrot.lane.b32.xlu1 %v119_v52, %s301_s23  ;;  %160 = vrot.lane.b32.xlu0 %v118_v51, %s301_s23 }
  0xaa   :  { %181 = vrot.lane.b32.xlu1 %v119_v52, %s302_s24  ;;  %179 = vrot.lane.b32.xlu0 %v118_v51, %s302_s24 }
 0x110   :  { %v125_v54 = vpop.permute.xlu1 %124  ;;  %v123_v55 = vpop.permute.xlu0 %122 }
 0x111   :  { %v127_v60 = vsel %vm126_vm4, %v123_v55, %v125_v54  ;;  %v128_v61 = vsel %vm126_vm4, %v125_v54, %v123_v55 }
 0x112   :  { %v137_v9 = vmul.f32 %v132_v57, %v128_v61  ;;  %v138_v10 = vmul.f32 %v136_v58, %v127_v60 }
 0x114   :  { %v144_v62 = vpop.permute.xlu1 %143  ;;  %v142_v1 = vpop.permute.xlu0 %141  ;;  %v139_v22 = vadd.f32 %v137_v9, %v120_v14  ;;  %v140_v23 = vadd.f32 %v138_v10, %v121_v13 }
 0x115   :  { %v146_v2 = vsel %vm145_vm5, %v142_v1, %v144_v62  ;;  %v147_v5 = vsel %vm145_vm5, %v144_v62, %v142_v1 }
 0x116   :  { %v156_v15 = vmul.f32 %v151_v63, %v147_v5  ;;  %v157_v16 = vmul.f32 %v155_v0, %v146_v2 }
 0x118   :  { %v163_v17 = vpop.permute.xlu1 %162  ;;  %v161_v18 = vpop.permute.xlu0 %160  ;;  %v158_v26 = vadd.f32 %v156_v15, %v139_v22  ;;  %v159_v27 = vadd.f32 %v157_v16, %v140_v23 }
 0x119   :  { %v165_v19 = vsel %vm164_vm6, %v161_v18, %v163_v17  ;;  %v166_v20 = vsel %vm164_vm6, %v163_v17, %v161_v18 }
 0x11a   :  { %v175_v24 = vmul.f32 %v170_v11, %v165_v19  ;;  %v176_v25 = vmul.f32 %v174_v12, %v166_v20 }
 0x11c   :  { %v182_v28 = vpop.permute.xlu1 %181  ;;  %v180_v29 = vpop.permute.xlu0 %179  ;;  %v177_v32 = vadd.f32 %v175_v24, %v158_v26  ;;  %v178_v6 = vadd.f32 %v176_v25, %v159_v27 }
 0x11d   :  { %v184_v30 = vsel %vm183_vm7, %v180_v29, %v182_v28  ;;  %v185_v31 = vsel %vm183_vm7, %v182_v28, %v180_v29 }
 0x11e   :  { %v194_v33 = vmul.f32 %v189_v21, %v184_v30  ;;  %v195_v7 = vmul.f32 %v193_v3, %v185_v31 }
 0x120   :  { %v196_v34 = vadd.f32 %v194_v33, %v177_v32  ;;  %v197_v35 = vadd.f32 %v195_v7, %v178_v6 }
 0x122   :  { %198 = vst [vmem:[#allocation7] sm:$0x3f] %v196_v34  ;;  %199 = vst [vmem:[#allocation7 + $0x8] sm:$0x3f] %v197_v35 }
 0x123   :  { %278 = shalt.err (!%p275_p0)
}
 0x124   :  { %209 = dma.vmem_to_hbm [thread:$0]  %s207_s26, 256, %s382_s2, [#allocation4]  }
 0x125   :  { %291 = dma.done.wait [#allocation4], 256  }
 0x126   :  { %292 = vsyncadd [#allocation4], 4294967040 }
 0x127   :  { %213 = vsyncpa [#allocation3], 1 }
 0x128   :  { %214 = vsyncpa [#allocation6], 1 }
 0x129   :  { %215 = vsyncpa [#allocation4], 1 }

</bundles_post_ra>
